<compile_context>
chip_gen: v7x
topology: tpu7x:2x2x1
jax: 0.10.0
libtpu: 0.0.40
codegen_flags: <defaults>
</compile_context>

<pallas_src>
import functools

import jax
import jax.numpy as jnp
from jax.experimental import pallas as pl
from jax.experimental.pallas import tpu as pltpu

_LANE = 128
_ACC_ROWS = 8
_MAX_BLOCK_ROWS = 4096   # (4096, 128) f32 tile = 2 MiB per input per buffer


def _cbce_kernel(o_ref, t_ref, cnt_ref, a_ref, b_ref, *, rows, block_rows):
    j = pl.program_id(0)

    @pl.when(j == 0)
    def _init():
        cnt_ref[...] = jnp.zeros_like(cnt_ref)
        a_ref[...] = jnp.zeros_like(a_ref)
        b_ref[...] = jnp.zeros_like(b_ref)

    def _accumulate(apply_mask):
        # Upcast inside the kernel (bf16 / int8 inputs accepted); f32 math.
        o = jnp.clip(o_ref[...].astype(jnp.float32), 1e-6, 1.0 - 1e-6)
        t = t_ref[...].astype(jnp.float32)
        cnt = jnp.where(t != 0.0, 1.0, 0.0)           # torch.nonzero count
        a = t * jnp.log(o)                            # t * log(o)
        b = (t - 1.0) * jnp.log(1.0 - o)              # (t-1) * log(1-o)
        if apply_mask:
            # Row-level validity only: the kernel only ever sees whole
            # 128-lane rows (sub-row remainder handled in JAX glue).
            # jnp.where is a select, so garbage/NaN in the overhang region of
            # the last block is dropped, never propagated.
            row = jax.lax.broadcasted_iota(jnp.int32, (block_rows, _LANE), 0)
            valid = (j * block_rows + row) < rows
            cnt = jnp.where(valid, cnt, 0.0)
            a = jnp.where(valid, a, 0.0)
            b = jnp.where(valid, b, 0.0)
        if block_rows % _ACC_ROWS == 0:
            # Tree-reduce the block down to a single (8, 128) vreg before
            # touching the accumulator (same VALU add count, ~zero stores).
            def _red(x):
                return x.reshape(block_rows // _ACC_ROWS, _ACC_ROWS, _LANE).sum(axis=0)
            cnt_ref[...] += _red(cnt)
            a_ref[...] += _red(a)
            b_ref[...] += _red(b)
        else:
            # Tiny single-block case (rows < 8 or not a multiple of 8).
            cnt_ref[0:1, :] = cnt_ref[0:1, :] + jnp.sum(cnt, axis=0, keepdims=True)
            a_ref[0:1, :] = a_ref[0:1, :] + jnp.sum(a, axis=0, keepdims=True)
            b_ref[0:1, :] = b_ref[0:1, :] + jnp.sum(b, axis=0, keepdims=True)

    if rows % block_rows == 0:
        # No block ever overhangs: interior fast path everywhere, no mask.
        _accumulate(False)
    else:
        last = pl.num_programs(0) - 1

        @pl.when(j < last)
        def _interior():
            _accumulate(False)

        @pl.when(j == last)
        def _tail():
            _accumulate(True)


def _partial_sums_jax(o, t):
    # Plain-JAX partial sums for the (<128-element) lane remainder.
    o = jnp.clip(o.astype(jnp.float32), 1e-6, 1.0 - 1e-6)
    t = t.astype(jnp.float32)
    cnt = jnp.sum((t != 0.0).astype(jnp.float32))
    a = jnp.sum(t * jnp.log(o))
    b = jnp.sum((t - 1.0) * jnp.log(1.0 - o))
    return cnt, a, b


@functools.partial(jax.jit, static_argnames=("max_block_rows",))
def class_balanced_cross_entropy(outputs, targets, *, max_block_rows=_MAX_BLOCK_ROWS):
    assert outputs.shape == targets.shape and outputs.ndim == 4
    batch = outputs.shape[0]
    n_total = outputs.size

    flat_o = outputs.reshape(-1)
    flat_t = targets.reshape(-1)

    # Lane-aligned main part handled by the kernel; any sub-128 remainder is
    # summed in plain JAX (no full-array pad/copy on the ragged path).
    n_main = (n_total // _LANE) * _LANE
    rem = n_total - n_main

    cnt_sum = jnp.float32(0.0)
    a_sum = jnp.float32(0.0)
    b_sum = jnp.float32(0.0)

    if n_main > 0:
        main_o = flat_o if rem == 0 else flat_o[:n_main]
        main_t = flat_t if rem == 0 else flat_t[:n_main]
        rows = n_main // _LANE
        block_rows = min(max_block_rows, rows)
        num_blocks = pl.cdiv(rows, block_rows)

        o2 = main_o.reshape(rows, _LANE)
        t2 = main_t.reshape(rows, _LANE)

        kernel = functools.partial(_cbce_kernel, rows=rows, block_rows=block_rows)

        acc_shape = jax.ShapeDtypeStruct((_ACC_ROWS, _LANE), jnp.float32)
        acc_spec = pl.BlockSpec((_ACC_ROWS, _LANE), lambda j: (0, 0))

        bytes_in = o2.size * o2.dtype.itemsize + t2.size * t2.dtype.itemsize
        cost = pl.CostEstimate(
            flops=10 * n_main,
            transcendentals=2 * n_main,
            bytes_accessed=bytes_in + 3 * _ACC_ROWS * _LANE * 4,
        )

        cnt_p, a_p, b_p = pl.pallas_call(
            kernel,
            out_shape=(acc_shape, acc_shape, acc_shape),
            grid_spec=pltpu.PrefetchScalarGridSpec(
                num_scalar_prefetch=0,
                grid=(num_blocks,),
                in_specs=[
                    pl.BlockSpec((block_rows, _LANE), lambda j: (j, 0)),
                    pl.BlockSpec((block_rows, _LANE), lambda j: (j, 0)),
                ],
                out_specs=(acc_spec, acc_spec, acc_spec),
            ),
            compiler_params=pltpu.CompilerParams(
                # TODO(synk): on v7x, add a leading CORE_PARALLEL grid axis to
                # shard this mem-bound sweep across both TensorCores.
                dimension_semantics=("arbitrary",),
                vmem_limit_bytes=32 * 1024 * 1024,
            ),
            cost_estimate=cost,
        )(o2, t2)

        cnt_sum = jnp.sum(cnt_p)
        a_sum = jnp.sum(a_p)
        b_sum = jnp.sum(b_p)

    if rem > 0:
        c_r, a_r, b_r = _partial_sums_jax(flat_o[n_main:], flat_t[n_main:])
        cnt_sum = cnt_sum + c_r
        a_sum = a_sum + a_r
        b_sum = b_sum + b_r

    alpha = cnt_sum / jnp.float32(n_total)
    loss = (-alpha * a_sum + (1.0 - alpha) * b_sum) / jnp.float32(batch)
    return loss


def _reference(outputs, targets):
    # Pure-JAX reference mirroring the PyTorch forward exactly.
    o = jnp.clip(outputs.astype(jnp.float32), 1e-6, 1.0 - 1e-6)
    t = targets.astype(jnp.float32)
    n_total = t.size
    n_nonzero = jnp.sum(t != 0.0).astype(jnp.float32)
    alpha = n_nonzero / n_total
    contour = -t * alpha * jnp.log(o)
    non_contour = (t - 1.0) * (1.0 - alpha) * jnp.log(1.0 - o)
    return jnp.sum(contour + non_contour) / outputs.shape[0]


def _check(loss, ref):
    assert jnp.allclose(loss, ref, rtol=1e-4, atol=1e-4), (loss, ref)


if __name__ == "__main__":
    key = jax.random.PRNGKey(0)
    ks = jax.random.split(key, 8)

    # 1) Primary case: B=2, C=4, H=W=16 (lane-aligned, single block).
    B, C, H, W = 2, 4, 16, 16
    outputs = jax.nn.sigmoid(jax.random.normal(ks[0], (B, C, H, W), jnp.float32))
    targets = (jax.random.uniform(ks[1], (B, C, H, W)) < 0.2).astype(jnp.float32)
    loss = class_balanced_cross_entropy(outputs, targets)
    jax.block_until_ready(loss)
    _check(loss, _reference(outputs, targets))

    # 2) Ragged case (n_total % 128 != 0): exercises the JAX remainder path
    #    and the small non-multiple-of-8-rows kernel branch.
    outputs2 = jax.nn.sigmoid(jax.random.normal(ks[2], (2, 3, 15, 17), jnp.float32))
    targets2 = (jax.random.uniform(ks[3], (2, 3, 15, 17)) < 0.2).astype(jnp.float32)
    loss2 = class_balanced_cross_entropy(outputs2, targets2)
    jax.block_until_ready(loss2)
    _check(loss2, _reference(outputs2, targets2))

    # 3) Multi-block grid with an overhanging last block (forced small block).
    outputs3 = jax.nn.sigmoid(jax.random.normal(ks[4], (1, 3, 40, 32), jnp.float32))
    targets3 = (jax.random.uniform(ks[5], (1, 3, 40, 32)) < 0.2).astype(jnp.float32)
    loss3 = class_balanced_cross_entropy(outputs3, targets3, max_block_rows=8)
    jax.block_until_ready(loss3)
    _check(loss3, _reference(outputs3, targets3))

    # 4) Lane-aligned but rows not a multiple of 8 (single-block tiny branch).
    outputs4 = jax.nn.sigmoid(jax.random.normal(ks[6], (2, 3, 16, 16), jnp.float32))
    targets4 = (jax.random.uniform(ks[7], (2, 3, 16, 16)) < 0.2).astype(jnp.float32)
    loss4 = class_balanced_cross_entropy(outputs4, targets4)
    jax.block_until_ready(loss4)
    _check(loss4, _reference(outputs4, targets4))

    print("KERNEL_OK")
</pallas_src>

<mosaic_0001>
module attributes {stable_mosaic.version = 11 : i64} {
  func.func @_cbce_kernel(%arg0: i32, %arg1: memref<16x128xf32, #tpu.memory_space<vmem>>, %arg2: memref<16x128xf32, #tpu.memory_space<vmem>>, %arg3: memref<8x128xf32, #tpu.memory_space<vmem>>, %arg4: memref<8x128xf32, #tpu.memory_space<vmem>>, %arg5: memref<8x128xf32, #tpu.memory_space<vmem>>) attributes {dimension_semantics = [#tpu.dimension_semantics<arbitrary>], iteration_bounds = array<i64: 1>, scalar_prefetch = 0 : i64, scratch_operands = 0 : i64, tpu.core_type = #tpu.core_type<tc>, window_params = [{transform_indices = @transform_0, window_bounds = array<i64: 16, 128>}, {transform_indices = @transform_1, window_bounds = array<i64: 16, 128>}, {pipeline_mode = #tpu.pipeline_mode<synchronous>, transform_indices = @transform_2, window_bounds = array<i64: 8, 128>}, {pipeline_mode = #tpu.pipeline_mode<synchronous>, transform_indices = @transform_3, window_bounds = array<i64: 8, 128>}, {pipeline_mode = #tpu.pipeline_mode<synchronous>, transform_indices = @transform_4, window_bounds = array<i64: 8, 128>}]} {
    %c0_i32 = arith.constant 0 : i32
    %0 = arith.cmpi eq, %arg0, %c0_i32 : i32
    %1 = arith.extui %0 : i1 to i32
    %c0_i32_0 = arith.constant 0 : i32
    %2 = arith.cmpi ne, %1, %c0_i32_0 : i32
    scf.if %2 {
      %cst_25 = arith.constant 0.000000e+00 : f32
      %37 = vector.broadcast %cst_25 : f32 to vector<8x128xf32>
      %c0_26 = arith.constant 0 : index
      %c0_27 = arith.constant 0 : index
      %38 = vector.load %arg3[%c0_26, %c0_27] : memref<8x128xf32, #tpu.memory_space<vmem>>, vector<8x128xf32>
      tpu.vector_store %arg3[%c0_26, %c0_27], %37 {strides = array<i32>} : memref<8x128xf32, #tpu.memory_space<vmem>>, vector<8x128xf32>,
      %cst_28 = arith.constant 0.000000e+00 : f32
      %39 = vector.broadcast %cst_28 : f32 to vector<8x128xf32>
      %c0_29 = arith.constant 0 : index
      %c0_30 = arith.constant 0 : index
      %40 = vector.load %arg4[%c0_29, %c0_30] : memref<8x128xf32, #tpu.memory_space<vmem>>, vector<8x128xf32>
      tpu.vector_store %arg4[%c0_29, %c0_30], %39 {strides = array<i32>} : memref<8x128xf32, #tpu.memory_space<vmem>>, vector<8x128xf32>,
      %cst_31 = arith.constant 0.000000e+00 : f32
      %41 = vector.broadcast %cst_31 : f32 to vector<8x128xf32>
      %c0_32 = arith.constant 0 : index
      %c0_33 = arith.constant 0 : index
      %42 = vector.load %arg5[%c0_32, %c0_33] : memref<8x128xf32, #tpu.memory_space<vmem>>, vector<8x128xf32>
      tpu.vector_store %arg5[%c0_32, %c0_33], %41 {strides = array<i32>} : memref<8x128xf32, #tpu.memory_space<vmem>>, vector<8x128xf32>,
    } else {
    }
    %c0 = arith.constant 0 : index
    %c0_1 = arith.constant 0 : index
    %3 = vector.load %arg1[%c0, %c0_1] : memref<16x128xf32, #tpu.memory_space<vmem>>, vector<16x128xf32>
    %cst = arith.constant 9.99999997E-7 : f32
    %cst_2 = arith.constant 0.999998986 : f32
    %4 = vector.broadcast %cst : f32 to vector<16x128xf32>
    %5 = arith.maximumf %4, %3 : vector<16x128xf32>
    %6 = vector.broadcast %cst_2 : f32 to vector<16x128xf32>
    %7 = arith.minimumf %6, %5 : vector<16x128xf32>
    %c0_3 = arith.constant 0 : index
    %c0_4 = arith.constant 0 : index
    %8 = vector.load %arg2[%c0_3, %c0_4] : memref<16x128xf32, #tpu.memory_space<vmem>>, vector<16x128xf32>
    %cst_5 = arith.constant 0.000000e+00 : f32
    %9 = vector.broadcast %cst_5 : f32 to vector<16x128xf32>
    %10 = arith.cmpf one, %8, %9 : vector<16x128xf32>
    %cst_6 = arith.constant 1.000000e+00 : f32
    %cst_7 = arith.constant 0.000000e+00 : f32
    %11 = vector.broadcast %cst_6 : f32 to vector<16x128xf32>
    %12 = vector.broadcast %cst_7 : f32 to vector<16x128xf32>
    %13 = arith.select %10, %11, %12 : vector<16x128xi1>, vector<16x128xf32>
    %14 = math.log %7 : vector<16x128xf32>
    %15 = arith.mulf %8, %14 : vector<16x128xf32>
    %cst_8 = arith.constant 1.000000e+00 : f32
    %16 = vector.broadcast %cst_8 : f32 to vector<16x128xf32>
    %17 = arith.subf %8, %16 : vector<16x128xf32>
    %cst_9 = arith.constant 1.000000e+00 : f32
    %18 = vector.broadcast %cst_9 : f32 to vector<16x128xf32>
    %19 = arith.subf %18, %7 : vector<16x128xf32>
    %20 = math.log %19 : vector<16x128xf32>
    %21 = arith.mulf %17, %20 : vector<16x128xf32>
    %c0_10 = arith.constant 0 : index
    %c0_11 = arith.constant 0 : index
    %22 = vector.load %arg3[%c0_10, %c0_11] : memref<8x128xf32, #tpu.memory_space<vmem>>, vector<8x128xf32>
    %23 = vector.shape_cast %13 : vector<16x128xf32> to vector<2x8x128xf32>
    %cst_12 = arith.constant dense<0.000000e+00> : vector<8x128xf32>
    %24 = vector.multi_reduction <add>, %23, %cst_12 [0] : vector<2x8x128xf32> to vector<8x128xf32>
    %25 = arith.addf %22, %24 : vector<8x128xf32>
    %c0_13 = arith.constant 0 : index
    %c0_14 = arith.constant 0 : index
    %26 = vector.load %arg3[%c0_13, %c0_14] : memref<8x128xf32, #tpu.memory_space<vmem>>, vector<8x128xf32>
    tpu.vector_store %arg3[%c0_13, %c0_14], %25 {strides = array<i32>} : memref<8x128xf32, #tpu.memory_space<vmem>>, vector<8x128xf32>,
    %c0_15 = arith.constant 0 : index
    %c0_16 = arith.constant 0 : index
    %27 = vector.load %arg4[%c0_15, %c0_16] : memref<8x128xf32, #tpu.memory_space<vmem>>, vector<8x128xf32>
    %28 = vector.shape_cast %15 : vector<16x128xf32> to vector<2x8x128xf32>
    %cst_17 = arith.constant dense<0.000000e+00> : vector<8x128xf32>
    %29 = vector.multi_reduction <add>, %28, %cst_17 [0] : vector<2x8x128xf32> to vector<8x128xf32>
    %30 = arith.addf %27, %29 : vector<8x128xf32>
    %c0_18 = arith.constant 0 : index
    %c0_19 = arith.constant 0 : index
    %31 = vector.load %arg4[%c0_18, %c0_19] : memref<8x128xf32, #tpu.memory_space<vmem>>, vector<8x128xf32>
    tpu.vector_store %arg4[%c0_18, %c0_19], %30 {strides = array<i32>} : memref<8x128xf32, #tpu.memory_space<vmem>>, vector<8x128xf32>,
    %c0_20 = arith.constant 0 : index
    %c0_21 = arith.constant 0 : index
    %32 = vector.load %arg5[%c0_20, %c0_21] : memref<8x128xf32, #tpu.memory_space<vmem>>, vector<8x128xf32>
    %33 = vector.shape_cast %21 : vector<16x128xf32> to vector<2x8x128xf32>
    %cst_22 = arith.constant dense<0.000000e+00> : vector<8x128xf32>
    %34 = vector.multi_reduction <add>, %33, %cst_22 [0] : vector<2x8x128xf32> to vector<8x128xf32>
    %35 = arith.addf %32, %34 : vector<8x128xf32>
    %c0_23 = arith.constant 0 : index
    %c0_24 = arith.constant 0 : index
    %36 = vector.load %arg5[%c0_23, %c0_24] : memref<8x128xf32, #tpu.memory_space<vmem>>, vector<8x128xf32>
    tpu.vector_store %arg5[%c0_23, %c0_24], %35 {strides = array<i32>} : memref<8x128xf32, #tpu.memory_space<vmem>>, vector<8x128xf32>,
    return
  }
  func.func @transform_0(%arg0: i32) -> (i32, i32) {
    %c0_i32 = arith.constant 0 : i32
    %c0_i32_0 = arith.constant 0 : i32
    return %arg0, %c0_i32 : i32, i32
  }
  func.func @transform_1(%arg0: i32) -> (i32, i32) {
    %c0_i32 = arith.constant 0 : i32
    %c0_i32_0 = arith.constant 0 : i32
    return %arg0, %c0_i32 : i32, i32
  }
  func.func @transform_2(%arg0: i32) -> (i32, i32) {
    %c0_i32 = arith.constant 0 : i32
    %c0_i32_0 = arith.constant 0 : i32
    %c0_i32_1 = arith.constant 0 : i32
    return %c0_i32, %c0_i32_0 : i32, i32
  }
  func.func @transform_3(%arg0: i32) -> (i32, i32) {
    %c0_i32 = arith.constant 0 : i32
    %c0_i32_0 = arith.constant 0 : i32
    %c0_i32_1 = arith.constant 0 : i32
    return %c0_i32, %c0_i32_0 : i32, i32
  }
  func.func @transform_4(%arg0: i32) -> (i32, i32) {
    %c0_i32 = arith.constant 0 : i32
    %c0_i32_0 = arith.constant 0 : i32
    %c0_i32_1 = arith.constant 0 : i32
    return %c0_i32, %c0_i32_0 : i32, i32
  }
}

</mosaic_0001>

<bundles_post_ra>
// kernel: class_balanced_cross_entropy.1
= control target key start
LH: loop header
LB: loop body
LE: loop exit
PB: predicated region body
PF: predicated region fallthrough
CT: control target
= control target key end

     0   :  { %v84_v5 = vmov 0.0   ;;  %s131_s1 = inlined_call_operand.vmem [shape: f32[16,128], index: 1, kind: input, shape index: {}]   ;;  %s132_s0 = inlined_call_operand.vmem [shape: f32[16,128], index: 0, kind: input, shape index: {}]   ;;  %s133_s2 = inlined_call_operand.vmem [shape: f32[8,128], index: 2, kind: output, shape index: {0}]   ;;  %s134_s3 = inlined_call_operand.vmem [shape: f32[8,128], index: 3, kind: output, shape index: {1}]   ;;  %s135_s4 = inlined_call_operand.vmem [shape: f32[8,128], index: 4, kind: output, shape index: {2}]  }
   0x1   :  { %v27_v0 = vld [vmem:[%s131_s1] sm:$0xff]  ;;  %v28_v1 = vld [vmem:[%s131_s1 + $0x8] sm:$0xff] }
   0x2   :  { %v21_v2 = vld [vmem:[%s132_s0] sm:$0xff]  ;;  %vm29_vm0 = vcmp.ne.f32.partialorder %v27_v0, 0.0  ;;  %vm30_vm1 = vcmp.ne.f32.partialorder %v28_v1, 0.0  ;;  %v22_v3 = vld [vmem:[%s132_s0 + $0x8] sm:$0xff]  ;;  %v73_v17 = vadd.f32 -1.0, %v27_v0  ;;  %v74_v20 = vadd.f32 -1.0, %v28_v1 }
   0x3   :  { %v23_v4 = vmax.f32 %v21_v2, 1e-06  ;;  %v31_v6 = vsel %vm29_vm0, 1.0, %v84_v5  ;;  %v32_v7 = vsel %vm30_vm1, 1.0, %v84_v5  ;;  %v24_v8 = vmax.f32 %v22_v3, 1e-06 }
   0x4   :  { %v50_v9 = vadd.f32 %v32_v7, %v31_v6 }
   0x5   :  { %v25_v10 = vmin.f32 %v23_v4, 0.999999  ;;  %v26_v11 = vmin.f32 %v24_v8, 0.999999 }
   0x6   :  { %52 = vst [vmem:[%s133_s2] sm:$0xff] %v50_v9 }
   0x7   :  { %76 = vlog2.f32 %v25_v10  ;;  %v41_v12 = vsub.f32 1.0, %v25_v10  ;;  %v42_v13 = vsub.f32 1.0, %v26_v11 }
   0x8   :  { %78 = vlog2.f32 %v26_v11 }
   0x9   :  { %80 = vlog2.f32 %v41_v12 }
   0xa   :  { %82 = vlog2.f32 %v42_v13 }
  0x11   :  { %v77_v14 = vpop.eup %76 }
  0x12   :  { %v79_v15 = vpop.eup %78  ;;  %v34_v16 = vmul.f32 0.6931472, %v77_v14 }
  0x13   :  { %v81_v18 = vpop.eup %80  ;;  %v36_v19 = vmul.f32 0.6931472, %v79_v15 }
  0x14   :  { %v83_v21 = vpop.eup %82  ;;  %v37_v22 = vmul.f32 %v34_v16, %v27_v0  ;;  %v44_v23 = vmul.f32 0.6931472, %v81_v18 }
  0x15   :  { %v38_v24 = vmul.f32 %v36_v19, %v28_v1  ;;  %v46_v25 = vmul.f32 0.6931472, %v83_v21 }
  0x16   :  { %v47_v26 = vmul.f32 %v73_v17, %v44_v23 }
  0x17   :  { %v54_v27 = vadd.f32 %v38_v24, %v37_v22  ;;  %v48_v28 = vmul.f32 %v74_v20, %v46_v25 }
  0x19   :  { %v58_v29 = vadd.f32 %v48_v28, %v47_v26  ;;  %56 = vst [vmem:[%s134_s3] sm:$0xff] %v54_v27 }
  0x1b   :  { %60 = vst [vmem:[%s135_s4] sm:$0xff] %v58_v29 }

</bundles_post_ra>
